<compile_context>
chip_gen: v5e
topology: v5e:2x2
jax: 0.10.0
libtpu: 0.0.40
codegen_flags: <defaults>
</compile_context>

<pallas_src>
import functools
import math

import jax
import jax.numpy as jnp
from jax import lax
from jax.experimental import pallas as pl
from jax.experimental.pallas import tpu as pltpu

TAU = 0.07        # NT-Xent temperature
_L2_EPS = 1e-12   # avoids NaN on an all-zero embedding row


def _round_up(x, m):
    return ((x + m - 1) // m) * m


def _pad_last(x, target):
    pad = target - x.shape[-1]
    if pad == 0:
        return x
    return jnp.pad(x, ((0, 0), (0, pad)))


# ----------------------------- fused Pallas kernel ---------------------------

def _ase_fused_kernel(l2_norm, tm, tau,
                      a_x_ref, c_x_ref,
                      aw1_ref, ab1_ref, aw2_ref, ab2_ref,
                      tw1_ref, tb1_ref, tw2_ref, tb2_ref,
                      ids_col_ref, ids_row_ref,
                      a_out_ref, c_out_ref, loss_ref):
    """Per grid step: embed one batch tile of audio + captions into the resident
    (B, Jp) output buffers.  At the last step: build the pos mask in-kernel and
    compute the symmetric NT-Xent loss from the resident embeddings."""
    i = pl.program_id(0)
    nb = pl.num_programs(0)
    row = pl.multiple_of(i * tm, tm)

    def mlp(x_ref, w1_ref, b1_ref, w2_ref, b2_ref):
        # Activations arrive pre-cast to bf16 from the wrapper (halves streamed
        # HBM bytes); MXU GEMMs in bf16 with f32 accumulation.
        x = x_ref[...]
        h = jnp.dot(x, w1_ref[...], preferred_element_type=jnp.float32) + b1_ref[...]
        h = jnp.maximum(h, 0.0)
        y = jnp.dot(h.astype(jnp.bfloat16), w2_ref[...],
                    preferred_element_type=jnp.float32) + b2_ref[...]
        if l2_norm:
            # torch l2norm(): X / sqrt(sum(X**2, dim=1, keepdim=True)); rsqrt on EUP.
            ss = jnp.sum(y * y, axis=1, keepdims=True)
            y = y * lax.rsqrt(ss + _L2_EPS)
        return y

    a_emb = mlp(a_x_ref, aw1_ref, ab1_ref, aw2_ref, ab2_ref)
    c_emb = mlp(c_x_ref, tw1_ref, tb1_ref, tw2_ref, tb2_ref)

    # Outputs are VMEM-resident across the whole grid (constant index_map,
    # single-buffered), so they double as the accumulator the loss reads.
    a_out_ref[pl.ds(row, tm), :] = a_emb
    c_out_ref[pl.ds(row, tm), :] = c_emb

    @pl.when(i == nb - 1)
    def _():
        inv_tau = 1.0 / tau
        # bf16 operands -> native MXU pass; f32 accumulation keeps logits accurate.
        a = a_out_ref[...].astype(jnp.bfloat16)
        c = c_out_ref[...].astype(jnp.bfloat16)
        # sim[i, j] = <a_i, c_j>; contract last dims directly (no transpose).
        sim = lax.dot_general(a, c, (((1,), (1,)), ((), ())),
                              preferred_element_type=jnp.float32) * inv_tau

        # positives(i, j) <=> mels_id[i] == mels_id[j]; built in-kernel.
        pos = ids_col_ref[...] == ids_row_ref[...]          # (B, B) bool

        # ONE shared shift -> ONE BxB exp (EUP) and ONE BxB select, reused by
        # both NT-Xent directions.  Shift cancels in log(all) - log(pos).
        if l2_norm:
            shift = inv_tau                 # |sim| <= 1/tau for unit-norm rows
        else:
            shift = jnp.max(sim)            # global max keeps exp() bounded
        e = jnp.exp(sim - shift)
        pos_e = jnp.where(pos, e, 0.0)

        # audio -> caption direction (row-wise sums).
        all_r = jnp.sum(e, axis=1, keepdims=True)           # (B, 1)
        pos_r = jnp.sum(pos_e, axis=1, keepdims=True)
        loss_r = jnp.mean(jnp.log(all_r) - jnp.log(pos_r))

        # caption -> audio direction: axis=0 reductions (no sim.T, no second exp).
        all_c = jnp.sum(e, axis=0, keepdims=True)           # (1, B)
        pos_c = jnp.sum(pos_e, axis=0, keepdims=True)
        loss_c = jnp.mean(jnp.log(all_c) - jnp.log(pos_c))

        loss_ref[0, 0] = 0.5 * (loss_r + loss_c)


# ------------------------------- wrappers ------------------------------------

def prepare_params(params):
    """Pad feature dims to multiples of 128 (exact: zero rows/cols/bias) and store
    weights in bf16 for the MXU (biases stay f32). Done once, outside the forward."""
    def prep(w1, b1, w2, b2):
        din, h = w1.shape
        j = w2.shape[1]
        din_p, h_p, j_p = _round_up(din, 128), _round_up(h, 128), _round_up(j, 128)
        w1p = jnp.pad(w1, ((0, din_p - din), (0, h_p - h))).astype(jnp.bfloat16)
        b1p = jnp.pad(b1, (0, h_p - h)).reshape(1, h_p).astype(jnp.float32)
        w2p = jnp.pad(w2, ((0, h_p - h), (0, j_p - j))).astype(jnp.bfloat16)
        b2p = jnp.pad(b2, (0, j_p - j)).reshape(1, j_p).astype(jnp.float32)
        return (w1p, b1p, w2p, b2p)
    return {"audio": prep(*params["audio"]), "text": prep(*params["text"])}


def _vmem_limit_bytes(B, TM, Dap, Dtp, Hpa, Hpt, Jp):
    """Explicit scoped-VMEM budget from the real footprint (review item)."""
    bf16, f32 = 2, 4
    weights = (Dap * Hpa + Hpa * Jp + Dtp * Hpt + Hpt * Jp) * bf16   # single-buffered
    biases = 8 * (Hpa + Hpt + 2 * Jp) * f32                          # (1,H) pads to 8 sublanes
    acts = 2 * 2 * TM * max(Dap, Dtp) * bf16                         # 2 streams x 2 buffers
    residents = 2 * B * Jp * f32                                     # (B, Jp) out buffers
    epilogue = 4 * B * B * f32                                       # sim / e / pos_e / pos temps
    total = weights + biases + acts + residents + epilogue
    total = int(total * 1.5) + (8 << 20)                             # headroom / compiler scratch
    # TODO(synk): on v7x (64 MiB physical VMEM) very large B needs the flash-style
    #             row-tiled epilogue before this cap is reachable.
    return max(32 << 20, min(total, 100 << 20))


def ase_forward(params, audio_encoded, caption_encoded, mels_id, *,
                joint_embed, l2_norm=True, tau=TAU):
    """Equivalent of ASE.forward (caption_encoded = text_enc(captions)) as one
    fused pallas_call. Returns (loss, audio_embed, caption_embed)."""
    B = audio_encoded.shape[0]
    aw1, ab1, aw2, ab2 = params["audio"]
    tw1, tb1, tw2, tb2 = params["text"]
    Dap, Hpa = aw1.shape
    Dtp, Hpt = tw1.shape
    Jp = aw2.shape[1]
    assert tw2.shape[1] == Jp

    assert B % 8 == 0, "batch must be a multiple of 8 (sublane tile)"
    # Larger batch tiles amortize the ~0.35us/step pipeline overhead (review:
    # sweep 512/1024 on v5e/v6e; 512 keeps the v7x budget comfortable too).
    TM = B if B <= 512 else 512
    assert B % TM == 0, "batch must be a multiple of the batch tile"
    nb = B // TM

    # Stream activations as bf16 (halves DMA bytes + tile VMEM).  Zero-padding
    # of the feature dim is exact because the padded weight rows are zero.
    a_x = _pad_last(audio_encoded.astype(jnp.float32), Dap).astype(jnp.bfloat16)
    c_x = _pad_last(caption_encoded.astype(jnp.float32), Dtp).astype(jnp.bfloat16)

    # mels_id as two tiny vectors; the B x B mask is built inside the kernel.
    ids_col = mels_id.astype(jnp.int32).reshape(B, 1)
    ids_row = mels_id.astype(jnp.int32).reshape(1, B)

    kernel = functools.partial(_ase_fused_kernel, l2_norm, TM, tau)

    # Constant-index operands never re-DMA: single-buffer them so they do not
    # pay the default 2x VMEM for buffers that are never refreshed.
    resident = pl.Buffered(buffer_count=1)

    grid_spec = pltpu.PrefetchScalarGridSpec(
        num_scalar_prefetch=0,
        grid=(nb,),
        in_specs=[
            pl.BlockSpec((TM, Dap), lambda i: (i, 0)),   # audio tile (bf16, pipelined)
            pl.BlockSpec((TM, Dtp), lambda i: (i, 0)),   # caption tile (bf16, pipelined)
            pl.BlockSpec((Dap, Hpa), lambda i: (0, 0), pipeline_mode=resident),  # audio W1
            pl.BlockSpec((1, Hpa), lambda i: (0, 0), pipeline_mode=resident),    # audio b1
            pl.BlockSpec((Hpa, Jp), lambda i: (0, 0), pipeline_mode=resident),   # audio W2
            pl.BlockSpec((1, Jp), lambda i: (0, 0), pipeline_mode=resident),     # audio b2
            pl.BlockSpec((Dtp, Hpt), lambda i: (0, 0), pipeline_mode=resident),  # text W1
            pl.BlockSpec((1, Hpt), lambda i: (0, 0), pipeline_mode=resident),    # text b1
            pl.BlockSpec((Hpt, Jp), lambda i: (0, 0), pipeline_mode=resident),   # text W2
            pl.BlockSpec((1, Jp), lambda i: (0, 0), pipeline_mode=resident),     # text b2
            pl.BlockSpec((B, 1), lambda i: (0, 0), pipeline_mode=resident),      # mels_id col
            pl.BlockSpec((1, B), lambda i: (0, 0), pipeline_mode=resident),      # mels_id row
        ],
        out_specs=(
            # Constant index_map -> VMEM-resident across the grid (accumulator);
            # single-buffered since the block never changes.
            pl.BlockSpec((B, Jp), lambda i: (0, 0), pipeline_mode=resident),
            pl.BlockSpec((B, Jp), lambda i: (0, 0), pipeline_mode=resident),
            # Scalar loss lives in SMEM (no masked 1-element vector store).
            pl.BlockSpec((1, 1), lambda i: (0, 0),
                         memory_space=pltpu.MemorySpace.SMEM),
        ),
    )

    a_emb_p, c_emb_p, loss = pl.pallas_call(
        kernel,
        out_shape=(
            jax.ShapeDtypeStruct((B, Jp), jnp.float32),
            jax.ShapeDtypeStruct((B, Jp), jnp.float32),
            jax.ShapeDtypeStruct((1, 1), jnp.float32),
        ),
        grid_spec=grid_spec,
        # "arbitrary": the final loss step depends on every batch tile's writes
        # to the resident output buffers, so the grid axis cannot be megacore-split.
        # TODO(synk): on v7x, split the embedding phase across the two TensorCores
        #             (core_map or a core-parallel leading axis + separate loss call).
        compiler_params=pltpu.CompilerParams(
            dimension_semantics=("arbitrary",),
            vmem_limit_bytes=_vmem_limit_bytes(B, TM, Dap, Dtp, Hpa, Hpt, Jp),
        ),
    )(a_x, c_x, aw1, ab1, aw2, ab2, tw1, tb1, tw2, tb2, ids_col, ids_row)

    return loss[0, 0], a_emb_p[:, :joint_embed], c_emb_p[:, :joint_embed]


# --------------------------- pure-JAX reference -------------------------------

def ase_forward_ref(params, audio_encoded, caption_encoded, mels_id, *,
                    l2_norm=True, tau=TAU):
    """Reference forward (same bf16-GEMM / f32-accumulate precision as the kernel)."""
    def mlp(x, w1, b1, w2, b2):
        h = jnp.dot(x.astype(jnp.bfloat16), w1.astype(jnp.bfloat16),
                    preferred_element_type=jnp.float32) + b1
        h = jnp.maximum(h, 0.0)
        y = jnp.dot(h.astype(jnp.bfloat16), w2.astype(jnp.bfloat16),
                    preferred_element_type=jnp.float32) + b2
        if l2_norm:
            y = y * lax.rsqrt(jnp.sum(y * y, axis=1, keepdims=True) + _L2_EPS)
        return y

    a = mlp(audio_encoded, *params["audio"])
    c = mlp(caption_encoded, *params["text"])
    sim = jnp.dot(a.astype(jnp.bfloat16), c.astype(jnp.bfloat16).T,
                  preferred_element_type=jnp.float32) / tau
    pos = mels_id[:, None] == mels_id[None, :]

    def one_dir(s):
        m = jnp.max(s, axis=1, keepdims=True)
        e = jnp.exp(s - m)
        return jnp.mean(jnp.log(jnp.sum(e, axis=1)) -
                        jnp.log(jnp.sum(jnp.where(pos, e, 0.0), axis=1)))

    loss = 0.5 * (one_dir(sim) + one_dir(sim.T))
    return loss, a, c


# --------------------------- deterministic params ----------------------------

def init_linear(key, fan_in, fan_out):
    kw, kb = jax.random.split(key)
    bound = 1.0 / math.sqrt(fan_in)
    w = jax.random.uniform(kw, (fan_in, fan_out), jnp.float32, -bound, bound)
    b = jax.random.uniform(kb, (fan_out,), jnp.float32, -bound, bound)
    return w, b


def init_params(key, in_dim_audio, bert_dim, joint_embed):
    k = jax.random.split(key, 4)
    aw1, ab1 = init_linear(k[0], in_dim_audio, joint_embed * 2)
    aw2, ab2 = init_linear(k[1], joint_embed * 2, joint_embed)
    tw1, tb1 = init_linear(k[2], bert_dim, joint_embed * 2)
    tw2, tb2 = init_linear(k[3], joint_embed * 2, joint_embed)
    return {"audio": (aw1, ab1, aw2, ab2), "text": (tw1, tb1, tw2, tb2)}


# ---------------------------------- main --------------------------------------

if __name__ == "__main__":
    B = 8               # batch
    IN_DIM_AUDIO = 64   # config.in_dim_audio
    BERT_DIM = 48       # MODELS[bert_type][2] (small synthetic stand-in)
    JOINT = 32          # config.joint_embed

    key = jax.random.PRNGKey(0)
    kp, ka, kc = jax.random.split(key, 3)

    params = init_params(kp, IN_DIM_AUDIO, BERT_DIM, JOINT)
    audio_encoded = jax.random.normal(ka, (B, IN_DIM_AUDIO), jnp.float32)
    caption_encoded = jax.random.normal(kc, (B, BERT_DIM), jnp.float32)
    mels_id = jnp.array([0, 0, 1, 1, 2, 2, 3, 3], dtype=jnp.int32)

    prepared = prepare_params(params)
    fwd = jax.jit(functools.partial(ase_forward, joint_embed=JOINT, l2_norm=True))
    loss, audio_embed, caption_embed = fwd(prepared, audio_encoded,
                                           caption_encoded, mels_id)
    jax.block_until_ready((loss, audio_embed, caption_embed))

    # Pure-JAX reference check (same matmul precision policy).
    ref_loss, ref_a, ref_c = jax.jit(
        functools.partial(ase_forward_ref, l2_norm=True)
    )(params, audio_encoded, caption_encoded, mels_id)
    jax.block_until_ready((ref_loss, ref_a, ref_c))

    assert audio_embed.shape == (B, JOINT) and caption_embed.shape == (B, JOINT)
    assert bool(jnp.isfinite(loss))
    # l2-normalized embeddings should have unit norm.
    assert bool(jnp.allclose(jnp.linalg.norm(audio_embed, axis=1), 1.0, atol=1e-3))
    assert bool(jnp.allclose(jnp.linalg.norm(caption_embed, axis=1), 1.0, atol=1e-3))
    # Match the reference forward.
    assert bool(jnp.allclose(audio_embed, ref_a, atol=5e-3, rtol=5e-3))
    assert bool(jnp.allclose(caption_embed, ref_c, atol=5e-3, rtol=5e-3))
    assert bool(jnp.allclose(loss, ref_loss, atol=5e-2, rtol=5e-2))

    print("KERNEL_OK")
</pallas_src>

<mosaic_0001>
module attributes {stable_mosaic.version = 11 : i64} {
  func.func @_ase_fused_kernel(%arg0: i32, %arg1: memref<8x128xbf16, #tpu.memory_space<vmem>>, %arg2: memref<8x128xbf16, #tpu.memory_space<vmem>>, %arg3: memref<128x128xbf16, #tpu.memory_space<vmem>>, %arg4: memref<1x128xf32, #tpu.memory_space<vmem>>, %arg5: memref<128x128xbf16, #tpu.memory_space<vmem>>, %arg6: memref<1x128xf32, #tpu.memory_space<vmem>>, %arg7: memref<128x128xbf16, #tpu.memory_space<vmem>>, %arg8: memref<1x128xf32, #tpu.memory_space<vmem>>, %arg9: memref<128x128xbf16, #tpu.memory_space<vmem>>, %arg10: memref<1x128xf32, #tpu.memory_space<vmem>>, %arg11: memref<8x1xi32, #tpu.memory_space<vmem>>, %arg12: memref<1x8xi32, #tpu.memory_space<vmem>>, %arg13: memref<8x128xf32, #tpu.memory_space<vmem>>, %arg14: memref<8x128xf32, #tpu.memory_space<vmem>>, %arg15: memref<1x1xf32, #tpu.memory_space<smem>>) attributes {dimension_semantics = [#tpu.dimension_semantics<arbitrary>], iteration_bounds = array<i64: 1>, scalar_prefetch = 0 : i64, scratch_operands = 0 : i64, tpu.core_type = #tpu.core_type<tc>, window_params = [{transform_indices = @transform_0, window_bounds = array<i64: 8, 128>}, {transform_indices = @transform_1, window_bounds = array<i64: 8, 128>}, {pipeline_mode = #tpu.pipeline_mode<synchronous>, transform_indices = @transform_2, window_bounds = array<i64: 128, 128>}, {pipeline_mode = #tpu.pipeline_mode<synchronous>, transform_indices = @transform_3, window_bounds = array<i64: 1, 128>}, {pipeline_mode = #tpu.pipeline_mode<synchronous>, transform_indices = @transform_4, window_bounds = array<i64: 128, 128>}, {pipeline_mode = #tpu.pipeline_mode<synchronous>, transform_indices = @transform_5, window_bounds = array<i64: 1, 128>}, {pipeline_mode = #tpu.pipeline_mode<synchronous>, transform_indices = @transform_6, window_bounds = array<i64: 128, 128>}, {pipeline_mode = #tpu.pipeline_mode<synchronous>, transform_indices = @transform_7, window_bounds = array<i64: 1, 128>}, {pipeline_mode = #tpu.pipeline_mode<synchronous>, transform_indices = @transform_8, window_bounds = array<i64: 128, 128>}, {pipeline_mode = #tpu.pipeline_mode<synchronous>, transform_indices = @transform_9, window_bounds = array<i64: 1, 128>}, {pipeline_mode = #tpu.pipeline_mode<synchronous>, transform_indices = @transform_10, window_bounds = array<i64: 8, 1>}, {pipeline_mode = #tpu.pipeline_mode<synchronous>, transform_indices = @transform_11, window_bounds = array<i64: 1, 8>}, {pipeline_mode = #tpu.pipeline_mode<synchronous>, transform_indices = @transform_12, window_bounds = array<i64: 8, 128>}, {pipeline_mode = #tpu.pipeline_mode<synchronous>, transform_indices = @transform_13, window_bounds = array<i64: 8, 128>}, {transform_indices = @transform_14, window_bounds = array<i64: 1, 1>}]} {
    %c8_i32 = arith.constant 8 : i32
    %0 = arith.muli %arg0, %c8_i32 : i32
    %1 = tpu.assume_multiple %0, 8 : i32
    %c0 = arith.constant 0 : index
    %c0_0 = arith.constant 0 : index
    %2 = vector.load %arg1[%c0, %c0_0] : memref<8x128xbf16, #tpu.memory_space<vmem>>, vector<8x128xbf16>
    %c0_1 = arith.constant 0 : index
    %c0_2 = arith.constant 0 : index
    %3 = vector.load %arg3[%c0_1, %c0_2] : memref<128x128xbf16, #tpu.memory_space<vmem>>, vector<128x128xbf16>
    %cst = arith.constant dense<0.000000e+00> : vector<8x128xf32>
    %4 = tpu.matmul %2, %3, %cst {dimension_numbers = #tpu.dot_dimension_numbers<[1], [0], [0], [1], [0, 0, 1, 1], [], []>} : vector<8x128xbf16>, vector<128x128xbf16>, vector<8x128xf32> -> vector<8x128xf32>
    %c0_3 = arith.constant 0 : index
    %c0_4 = arith.constant 0 : index
    %5 = vector.load %arg4[%c0_3, %c0_4] : memref<1x128xf32, #tpu.memory_space<vmem>>, vector<1x128xf32>
    %6 = vector.broadcast %5 : vector<1x128xf32> to vector<8x128xf32>
    %7 = arith.addf %4, %6 : vector<8x128xf32>
    %cst_5 = arith.constant 0.000000e+00 : f32
    %8 = vector.broadcast %cst_5 : f32 to vector<8x128xf32>
    %9 = arith.maximumf %7, %8 : vector<8x128xf32>
    %10 = arith.truncf %9 : vector<8x128xf32> to vector<8x128xbf16>
    %c0_6 = arith.constant 0 : index
    %c0_7 = arith.constant 0 : index
    %11 = vector.load %arg5[%c0_6, %c0_7] : memref<128x128xbf16, #tpu.memory_space<vmem>>, vector<128x128xbf16>
    %cst_8 = arith.constant dense<0.000000e+00> : vector<8x128xf32>
    %12 = tpu.matmul %10, %11, %cst_8 {dimension_numbers = #tpu.dot_dimension_numbers<[1], [0], [0], [1], [0, 0, 1, 1], [], []>} : vector<8x128xbf16>, vector<128x128xbf16>, vector<8x128xf32> -> vector<8x128xf32>
    %c0_9 = arith.constant 0 : index
    %c0_10 = arith.constant 0 : index
    %13 = vector.load %arg6[%c0_9, %c0_10] : memref<1x128xf32, #tpu.memory_space<vmem>>, vector<1x128xf32>
    %14 = vector.broadcast %13 : vector<1x128xf32> to vector<8x128xf32>
    %15 = arith.addf %12, %14 : vector<8x128xf32>
    %16 = arith.mulf %15, %15 : vector<8x128xf32>
    %cst_11 = arith.constant dense<0.000000e+00> : vector<8xf32>
    %17 = vector.multi_reduction <add>, %16, %cst_11 [1] : vector<8x128xf32> to vector<8xf32>
    %18 = vector.shape_cast %17 : vector<8xf32> to vector<8x1xf32>
    %cst_12 = arith.constant 9.99999996E-13 : f32
    %19 = vector.broadcast %cst_12 : f32 to vector<8x1xf32>
    %20 = arith.addf %18, %19 : vector<8x1xf32>
    %21 = math.rsqrt %20 : vector<8x1xf32>
    %22 = vector.broadcast %21 : vector<8x1xf32> to vector<8x128xf32>
    %23 = arith.mulf %15, %22 : vector<8x128xf32>
    %c0_13 = arith.constant 0 : index
    %c0_14 = arith.constant 0 : index
    %24 = vector.load %arg2[%c0_13, %c0_14] : memref<8x128xbf16, #tpu.memory_space<vmem>>, vector<8x128xbf16>
    %c0_15 = arith.constant 0 : index
    %c0_16 = arith.constant 0 : index
    %25 = vector.load %arg7[%c0_15, %c0_16] : memref<128x128xbf16, #tpu.memory_space<vmem>>, vector<128x128xbf16>
    %cst_17 = arith.constant dense<0.000000e+00> : vector<8x128xf32>
    %26 = tpu.matmul %24, %25, %cst_17 {dimension_numbers = #tpu.dot_dimension_numbers<[1], [0], [0], [1], [0, 0, 1, 1], [], []>} : vector<8x128xbf16>, vector<128x128xbf16>, vector<8x128xf32> -> vector<8x128xf32>
    %c0_18 = arith.constant 0 : index
    %c0_19 = arith.constant 0 : index
    %27 = vector.load %arg8[%c0_18, %c0_19] : memref<1x128xf32, #tpu.memory_space<vmem>>, vector<1x128xf32>
    %28 = vector.broadcast %27 : vector<1x128xf32> to vector<8x128xf32>
    %29 = arith.addf %26, %28 : vector<8x128xf32>
    %cst_20 = arith.constant 0.000000e+00 : f32
    %30 = vector.broadcast %cst_20 : f32 to vector<8x128xf32>
    %31 = arith.maximumf %29, %30 : vector<8x128xf32>
    %32 = arith.truncf %31 : vector<8x128xf32> to vector<8x128xbf16>
    %c0_21 = arith.constant 0 : index
    %c0_22 = arith.constant 0 : index
    %33 = vector.load %arg9[%c0_21, %c0_22] : memref<128x128xbf16, #tpu.memory_space<vmem>>, vector<128x128xbf16>
    %cst_23 = arith.constant dense<0.000000e+00> : vector<8x128xf32>
    %34 = tpu.matmul %32, %33, %cst_23 {dimension_numbers = #tpu.dot_dimension_numbers<[1], [0], [0], [1], [0, 0, 1, 1], [], []>} : vector<8x128xbf16>, vector<128x128xbf16>, vector<8x128xf32> -> vector<8x128xf32>
    %c0_24 = arith.constant 0 : index
    %c0_25 = arith.constant 0 : index
    %35 = vector.load %arg10[%c0_24, %c0_25] : memref<1x128xf32, #tpu.memory_space<vmem>>, vector<1x128xf32>
    %36 = vector.broadcast %35 : vector<1x128xf32> to vector<8x128xf32>
    %37 = arith.addf %34, %36 : vector<8x128xf32>
    %38 = arith.mulf %37, %37 : vector<8x128xf32>
    %cst_26 = arith.constant dense<0.000000e+00> : vector<8xf32>
    %39 = vector.multi_reduction <add>, %38, %cst_26 [1] : vector<8x128xf32> to vector<8xf32>
    %40 = vector.shape_cast %39 : vector<8xf32> to vector<8x1xf32>
    %cst_27 = arith.constant 9.99999996E-13 : f32
    %41 = vector.broadcast %cst_27 : f32 to vector<8x1xf32>
    %42 = arith.addf %40, %41 : vector<8x1xf32>
    %43 = math.rsqrt %42 : vector<8x1xf32>
    %44 = vector.broadcast %43 : vector<8x1xf32> to vector<8x128xf32>
    %45 = arith.mulf %37, %44 : vector<8x128xf32>
    %46 = arith.index_cast %1 : i32 to index
    %c0_28 = arith.constant 0 : index
    %47 = vector.load %arg13[%46, %c0_28] : memref<8x128xf32, #tpu.memory_space<vmem>>, vector<8x128xf32>
    tpu.vector_store %arg13[%46, %c0_28], %23 {strides = array<i32>} : memref<8x128xf32, #tpu.memory_space<vmem>>, vector<8x128xf32>,
    %48 = arith.index_cast %1 : i32 to index
    %c0_29 = arith.constant 0 : index
    %49 = vector.load %arg14[%48, %c0_29] : memref<8x128xf32, #tpu.memory_space<vmem>>, vector<8x128xf32>
    tpu.vector_store %arg14[%48, %c0_29], %45 {strides = array<i32>} : memref<8x128xf32, #tpu.memory_space<vmem>>, vector<8x128xf32>,
    %c0_i32 = arith.constant 0 : i32
    %50 = arith.cmpi eq, %arg0, %c0_i32 : i32
    %51 = arith.extui %50 : i1 to i32
    %c0_i32_30 = arith.constant 0 : i32
    %52 = arith.cmpi ne, %51, %c0_i32_30 : i32
    scf.if %52 {
      %c0_31 = arith.constant 0 : index
      %c0_32 = arith.constant 0 : index
      %53 = vector.load %arg13[%c0_31, %c0_32] : memref<8x128xf32, #tpu.memory_space<vmem>>, vector<8x128xf32>
      %54 = arith.truncf %53 : vector<8x128xf32> to vector<8x128xbf16>
      %c0_33 = arith.constant 0 : index
      %c0_34 = arith.constant 0 : index
      %55 = vector.load %arg14[%c0_33, %c0_34] : memref<8x128xf32, #tpu.memory_space<vmem>>, vector<8x128xf32>
      %56 = arith.truncf %55 : vector<8x128xf32> to vector<8x128xbf16>
      %cst_35 = arith.constant dense<0.000000e+00> : vector<8x8xf32>
      %57 = tpu.matmul %54, %56, %cst_35 {dimension_numbers = #tpu.dot_dimension_numbers<[1], [1], [0], [0], [0, 0, 1, 0], [], []>} : vector<8x128xbf16>, vector<8x128xbf16>, vector<8x8xf32> -> vector<8x8xf32>
      %cst_36 = arith.constant 14.2857141 : f32
      %58 = vector.broadcast %cst_36 : f32 to vector<8x8xf32>
      %59 = arith.mulf %57, %58 : vector<8x8xf32>
      %c0_37 = arith.constant 0 : index
      %c0_38 = arith.constant 0 : index
      %60 = vector.load %arg11[%c0_37, %c0_38] : memref<8x1xi32, #tpu.memory_space<vmem>>, vector<8x1xi32>
      %c0_39 = arith.constant 0 : index
      %c0_40 = arith.constant 0 : index
      %61 = vector.load %arg12[%c0_39, %c0_40] : memref<1x8xi32, #tpu.memory_space<vmem>>, vector<1x8xi32>
      %62 = vector.broadcast %60 : vector<8x1xi32> to vector<8x8xi32>
      %63 = vector.broadcast %61 : vector<1x8xi32> to vector<8x8xi32>
      %64 = arith.cmpi eq, %62, %63 : vector<8x8xi32>
      %cst_41 = arith.constant 14.2857141 : f32
      %65 = vector.broadcast %cst_41 : f32 to vector<8x8xf32>
      %66 = arith.subf %59, %65 : vector<8x8xf32>
      %67 = math.exp %66 : vector<8x8xf32>
      %cst_42 = arith.constant 0.000000e+00 : f32
      %68 = vector.broadcast %cst_42 : f32 to vector<8x8xf32>
      %69 = arith.select %64, %67, %68 : vector<8x8xi1>, vector<8x8xf32>
      %cst_43 = arith.constant dense<0.000000e+00> : vector<8xf32>
      %70 = vector.multi_reduction <add>, %67, %cst_43 [1] : vector<8x8xf32> to vector<8xf32>
      %71 = vector.shape_cast %70 : vector<8xf32> to vector<8x1xf32>
      %cst_44 = arith.constant dense<0.000000e+00> : vector<8xf32>
      %72 = vector.multi_reduction <add>, %69, %cst_44 [1] : vector<8x8xf32> to vector<8xf32>
      %73 = vector.shape_cast %72 : vector<8xf32> to vector<8x1xf32>
      %74 = math.log %71 : vector<8x1xf32>
      %75 = math.log %73 : vector<8x1xf32>
      %76 = arith.subf %74, %75 : vector<8x1xf32>
      %77 = vector.shape_cast %76 : vector<8x1xf32> to vector<1x8x1xf32>
      %cst_45 = arith.constant dense<0.000000e+00> : vector<1xf32>
      %78 = vector.multi_reduction <add>, %77, %cst_45 [1, 2] : vector<1x8x1xf32> to vector<1xf32>
      %79 = vector.shape_cast %78 : vector<1xf32> to vector<1x1x1xf32>
      %80 = vector.extract %79[0, 0, 0] : f32 from vector<1x1x1xf32>
      %cst_46 = arith.constant 8.000000e+00 : f32
      %81 = arith.divf %80, %cst_46 : f32
      %cst_47 = arith.constant dense<0.000000e+00> : vector<8xf32>
      %82 = vector.multi_reduction <add>, %67, %cst_47 [0] : vector<8x8xf32> to vector<8xf32>
      %83 = vector.shape_cast %82 : vector<8xf32> to vector<1x8xf32>
      %cst_48 = arith.constant dense<0.000000e+00> : vector<8xf32>
      %84 = vector.multi_reduction <add>, %69, %cst_48 [0] : vector<8x8xf32> to vector<8xf32>
      %85 = vector.shape_cast %84 : vector<8xf32> to vector<1x8xf32>
      %86 = math.log %83 : vector<1x8xf32>
      %87 = math.log %85 : vector<1x8xf32>
      %88 = arith.subf %86, %87 : vector<1x8xf32>
      %89 = vector.shape_cast %88 : vector<1x8xf32> to vector<1x1x8xf32>
      %cst_49 = arith.constant dense<0.000000e+00> : vector<1xf32>
      %90 = vector.multi_reduction <add>, %89, %cst_49 [1, 2] : vector<1x1x8xf32> to vector<1xf32>
      %91 = vector.shape_cast %90 : vector<1xf32> to vector<1x1x1xf32>
      %92 = vector.extract %91[0, 0, 0] : f32 from vector<1x1x1xf32>
      %cst_50 = arith.constant 8.000000e+00 : f32
      %93 = arith.divf %92, %cst_50 : f32
      %94 = arith.addf %81, %93 : f32
      %cst_51 = arith.constant 5.000000e-01 : f32
      %95 = arith.mulf %cst_51, %94 : f32
      %c0_52 = arith.constant 0 : index
      %c0_53 = arith.constant 0 : index
      %96 = memref.load %arg15[%c0_52, %c0_53] : memref<1x1xf32, #tpu.memory_space<smem>>
      memref.store %95, %arg15[%c0_52, %c0_53] : memref<1x1xf32, #tpu.memory_space<smem>>
    } else {
    }
    return
  }
  func.func @transform_0(%arg0: i32) -> (i32, i32) {
    %c0_i32 = arith.constant 0 : i32
    %c0_i32_0 = arith.constant 0 : i32
    return %arg0, %c0_i32 : i32, i32
  }
  func.func @transform_1(%arg0: i32) -> (i32, i32) {
    %c0_i32 = arith.constant 0 : i32
    %c0_i32_0 = arith.constant 0 : i32
    return %arg0, %c0_i32 : i32, i32
  }
  func.func @transform_2(%arg0: i32) -> (i32, i32) {
    %c0_i32 = arith.constant 0 : i32
    %c0_i32_0 = arith.constant 0 : i32
    %c0_i32_1 = arith.constant 0 : i32
    return %c0_i32, %c0_i32_0 : i32, i32
  }
  func.func @transform_3(%arg0: i32) -> (i32, i32) {
    %c0_i32 = arith.constant 0 : i32
    %c0_i32_0 = arith.constant 0 : i32
    %c0_i32_1 = arith.constant 0 : i32
    return %c0_i32, %c0_i32_0 : i32, i32
  }
  func.func @transform_4(%arg0: i32) -> (i32, i32) {
    %c0_i32 = arith.constant 0 : i32
    %c0_i32_0 = arith.constant 0 : i32
    %c0_i32_1 = arith.constant 0 : i32
    return %c0_i32, %c0_i32_0 : i32, i32
  }
  func.func @transform_5(%arg0: i32) -> (i32, i32) {
    %c0_i32 = arith.constant 0 : i32
    %c0_i32_0 = arith.constant 0 : i32
    %c0_i32_1 = arith.constant 0 : i32
    return %c0_i32, %c0_i32_0 : i32, i32
  }
  func.func @transform_6(%arg0: i32) -> (i32, i32) {
    %c0_i32 = arith.constant 0 : i32
    %c0_i32_0 = arith.constant 0 : i32
    %c0_i32_1 = arith.constant 0 : i32
    return %c0_i32, %c0_i32_0 : i32, i32
  }
  func.func @transform_7(%arg0: i32) -> (i32, i32) {
    %c0_i32 = arith.constant 0 : i32
    %c0_i32_0 = arith.constant 0 : i32
    %c0_i32_1 = arith.constant 0 : i32
    return %c0_i32, %c0_i32_0 : i32, i32
  }
  func.func @transform_8(%arg0: i32) -> (i32, i32) {
    %c0_i32 = arith.constant 0 : i32
    %c0_i32_0 = arith.constant 0 : i32
    %c0_i32_1 = arith.constant 0 : i32
    return %c0_i32, %c0_i32_0 : i32, i32
  }
  func.func @transform_9(%arg0: i32) -> (i32, i32) {
    %c0_i32 = arith.constant 0 : i32
    %c0_i32_0 = arith.constant 0 : i32
    %c0_i32_1 = arith.constant 0 : i32
    return %c0_i32, %c0_i32_0 : i32, i32
  }
  func.func @transform_10(%arg0: i32) -> (i32, i32) {
    %c0_i32 = arith.constant 0 : i32
    %c0_i32_0 = arith.constant 0 : i32
    %c0_i32_1 = arith.constant 0 : i32
    return %c0_i32, %c0_i32_0 : i32, i32
  }
  func.func @transform_11(%arg0: i32) -> (i32, i32) {
    %c0_i32 = arith.constant 0 : i32
    %c0_i32_0 = arith.constant 0 : i32
    %c0_i32_1 = arith.constant 0 : i32
    return %c0_i32, %c0_i32_0 : i32, i32
  }
  func.func @transform_12(%arg0: i32) -> (i32, i32) {
    %c0_i32 = arith.constant 0 : i32
    %c0_i32_0 = arith.constant 0 : i32
    %c0_i32_1 = arith.constant 0 : i32
    return %c0_i32, %c0_i32_0 : i32, i32
  }
  func.func @transform_13(%arg0: i32) -> (i32, i32) {
    %c0_i32 = arith.constant 0 : i32
    %c0_i32_0 = arith.constant 0 : i32
    %c0_i32_1 = arith.constant 0 : i32
    return %c0_i32, %c0_i32_0 : i32, i32
  }
  func.func @transform_14(%arg0: i32) -> (i32, i32) {
    %c0_i32 = arith.constant 0 : i32
    %c0_i32_0 = arith.constant 0 : i32
    %c0_i32_1 = arith.constant 0 : i32
    return %c0_i32, %c0_i32_0 : i32, i32
  }
}

</mosaic_0001>

<bundles_post_ra>
// kernel: ase_forward.1
= control target key start
LH: loop header
LB: loop body
LE: loop exit
PB: predicated region body
PF: predicated region fallthrough
CT: control target
= control target key end

     0   :  { %20 = vsyncpa [#allocation3], 0  ;;  %s1132_s0 = inlined_call_operand.vmem [shape: bf16[8,128], index: 0, kind: input, shape index: {}]   ;;  %s1133_s1 = inlined_call_operand.vmem [shape: bf16[8,128], index: 1, kind: input, shape index: {}]   ;;  %s1134_s2 = inlined_call_operand.hbm [shape: bf16[128,128], index: 2, kind: input, shape index: {}]   ;;  %s1135_s3 = inlined_call_operand.vmem [shape: f32[1,128], index: 3, kind: input, shape index: {}]   ;;  %s1136_s4 = inlined_call_operand.hbm [shape: bf16[128,128], index: 4, kind: input, shape index: {}]   ;;  %s1137_s5 = inlined_call_operand.vmem [shape: f32[1,128], index: 5, kind: input, shape index: {}]   ;;  %s1138_s6 = inlined_call_operand.hbm [shape: bf16[128,128], index: 6, kind: input, shape index: {}]   ;;  %s1139_s7 = inlined_call_operand.vmem [shape: f32[1,128], index: 7, kind: input, shape index: {}]   ;;  %s1140_s8 = inlined_call_operand.hbm [shape: bf16[128,128], index: 8, kind: input, shape index: {}]   ;;  %s1141_s9 = inlined_call_operand.vmem [shape: f32[1,128], index: 9, kind: input, shape index: {}]   ;;  %s1142_s10 = inlined_call_operand.vmem [shape: s32[8,1], index: 10, kind: input, shape index: {}]   ;;  %s1143_s11 = inlined_call_operand.vmem [shape: s32[1,8], index: 11, kind: input, shape index: {}]   ;;  %s1144_s12 = inlined_call_operand.hbm [shape: f32[8,128], index: 12, kind: output, shape index: {0}]   ;;  %s1145_s13 = inlined_call_operand.hbm [shape: f32[8,128], index: 13, kind: output, shape index: {1}]   ;;  %s1146_s14 = inlined_call_operand.hbm [shape: f32[1,1], index: 14, kind: output, shape index: {2}]  }
   0x1   :  { %21 = vsyncpa [#allocation7], 0 }
   0x2   :  { %22 = vsyncpa [#allocation10], 0 }
   0x3   :  { %23 = vsyncpa [#allocation4], 0 }
   0x4   :  { %24 = vsyncpa [#allocation13], 0 }
   0x5   :  { %25 = vsyncpa [#allocation5], 0  ;;  %s49_s15 = sshll.u32 %s1136_s4, 4  ;;  %s1001_s16 = smov [#allocation6]   ;;  %s50_s15 = int_to_ptr.hbm [resolvable:$true] %s49_s15 }
   0x6   :  { %s51_s17 = sshll.u32 %s1001_s16, 4  ;;  %s34_s20 = sshll.u32 %s1134_s2, 4  ;;  %s52_s17 = int_to_ptr.vmem [resolvable:$true] %s51_s17  ;;  %s35_s20 = int_to_ptr.hbm [resolvable:$true] %s34_s20 }
   0x7   :  { %s1002_s21 = smov 64   ;;  %s1003_s22 = smov 4  }
   0x8   :  { %57 = dma.hbm_to_vmem [thread:$0]  %s50_s15, 1024, %s52_s17, [#allocation7], %s1002_s21, %s1002_s21, %s1003_s22  }
   0x9   :  { %s1004_s23 = smov [#allocation2]   ;;  %s64_s27 = sshll.u32 %s1138_s6, 4  ;;  %s65_s27 = int_to_ptr.hbm [resolvable:$true] %s64_s27 }
   0xa   :  { %s36_s24 = sshll.u32 %s1004_s23, 4  ;;  %s79_s29 = sshll.u32 %s1140_s8, 4  ;;  %s37_s24 = int_to_ptr.vmem [resolvable:$true] %s36_s24  ;;  %s80_s29 = int_to_ptr.hbm [resolvable:$true] %s79_s29 }
   0xb   :  { %42 = dma.hbm_to_vmem [thread:$0]  %s35_s20, 1024, %s37_s24, [#allocation3], %s1002_s21, %s1002_s21, %s1003_s22  }
   0xc   :  { %s1005_s30 = smov [#allocation8]   ;;  %s1006_s2 = smov [#allocation9]  }
   0xd   :  { %s66_s16 = sshll.u32 %s1005_s30, 4  ;;  %s81_s15 = sshll.u32 %s1006_s2, 4  ;;  %s67_s16 = int_to_ptr.vmem [resolvable:$true] %s66_s16  ;;  %s82_s15 = int_to_ptr.vmem [resolvable:$true] %s81_s15 }
   0xe   :  { %72 = dma.hbm_to_vmem [thread:$0]  %s65_s27, 1024, %s67_s16, [#allocation7], %s1002_s21, %s1002_s21, %s1003_s22  }
   0xf   :  { %87 = dma.hbm_to_vmem [thread:$0]  %s80_s29, 1024, %s82_s15, [#allocation10], %s1002_s21, %s1002_s21, %s1003_s22  }
  0x10   :  { %989 = dma.done.wait [#allocation3], 1024  }
  0x11   :  { %990 = vsyncadd [#allocation3], 4294966272 }
  0x12   :  { %991 = dma.done.wait [#allocation7], 2048  }
  0x13   :  { %992 = vsyncadd [#allocation7], 4294965248 }
  0x14   :  { %993 = dma.done.wait [#allocation10], 1024  }
  0x15   :  { %994 = vsyncadd [#allocation10], 4294966272  ;;  %v784_v0 = vld [vmem:[#allocation8 + $0x38] sm:$0xff]  ;;  %v783_v2 = vld [vmem:[#allocation8 + $0x30] sm:$0xff]  ;;  %v1007_v59 = vmov 0   ;;  %vm509_vm7 = vcmask 64512  }
  0x16   :  { %v768_v1 = vld [vmem:[#allocation2 + $0x38] sm:$0xff]  ;;  %361 = vmatpush.bf16.msra.mxu2 %v784_v0  ;;  %v767_v3 = vld [vmem:[#allocation2 + $0x30] sm:$0xff]  ;;  %v782_v4 = vld [vmem:[#allocation8 + $0x28] sm:$0xff]  ;;  %810 = vset.pattern.permute.xlu1 %v1007_v59  ;;  %vm558_vm8 = vcmask 57344   ;;  %vm521_vm9 = vcmask 7168   ;;  %s589_s25 = sshll.u32 %s1144_s12, 4  ;;  %s590_s25 = int_to_ptr.hbm [resolvable:$true] %s589_s25 }
  0x17   :  { %181 = vmatpush.bf16.msra.mxu0 %v768_v1  ;;  %v792_v5 = vld [vmem:[#allocation9 + $0x38] sm:$0xff]  ;;  %v766_v6 = vld [vmem:[#allocation2 + $0x28] sm:$0xff]  ;;  %v781_v8 = vld [vmem:[#allocation8 + $0x20] sm:$0xff]  ;;  %811 = vset.pattern.permute.xlu0 %v1007_v59  ;;  %s1008_s26 = smov [#allocation11]   ;;  %s1009_s4 = smov [#allocation12]  }
  0x18   :  { %v776_v7 = vld [vmem:[#allocation6 + $0x38] sm:$0xff]  ;;  %444 = vmatpush.bf16.msra.mxu3 %v792_v5  ;;  %v791_v9 = vld [vmem:[#allocation9 + $0x30] sm:$0xff]  ;;  %v765_v11 = vld [vmem:[#allocation2 + $0x20] sm:$0xff]  ;;  %s587_s27 = sshll.u32 %s1008_s26, 4  ;;  %s598_s28 = sshll.u32 %s1009_s4, 4  ;;  %s588_s27 = int_to_ptr.vmem [resolvable:$true] %s587_s27  ;;  %s599_s28 = int_to_ptr.vmem [resolvable:$true] %s598_s28 }
  0x19   :  { %264 = vmatpush.bf16.msra.mxu1 %v776_v7  ;;  %v775_v10 = vld [vmem:[#allocation6 + $0x30] sm:$0xff]  ;;  %v790_v12 = vld [vmem:[#allocation9 + $0x28] sm:$0xff]  ;;  %v780_v14 = vld [vmem:[#allocation8 + $0x18] sm:$0xff]  ;;  %s600_s16 = sshll.u32 %s1145_s13, 4  ;;  %s609_s18 = sshll.u32 %s1146_s14, 4  ;;  %s601_s16 = int_to_ptr.hbm [resolvable:$true] %s600_s16  ;;  %s610_s18 = int_to_ptr.hbm [resolvable:$true] %s609_s18 }
  0x1a   :  { %362 = vmatpush.bf16.msra.mxu2 %v783_v2  ;;  %v774_v13 = vld [vmem:[#allocation6 + $0x28] sm:$0xff]  ;;  %v764_v15 = vld [vmem:[#allocation2 + $0x18] sm:$0xff]  ;;  %v789_v16 = vld [vmem:[#allocation9 + $0x20] sm:$0xff] }
  0x1b   :  { %182 = vmatpush.bf16.msra.mxu0 %v767_v3  ;;  %v779_v17 = vld [vmem:[#allocation8 + $0x10] sm:$0xff]  ;;  %v788_v19 = vld [vmem:[#allocation9 + $0x18] sm:$0xff]  ;;  %v778_v20 = vld [vmem:[#allocation8 + $0x8] sm:$0xff] }
  0x1c   :  { %445 = vmatpush.bf16.msra.mxu3 %v791_v9  ;;  %v763_v18 = vld [vmem:[#allocation2 + $0x10] sm:$0xff]  ;;  %v762_v21 = vld [vmem:[#allocation2 + $0x8] sm:$0xff]  ;;  %v777_v23 = vld [vmem:[#allocation8] sm:$0xff] }
  0x1d   :  { %265 = vmatpush.bf16.msra.mxu1 %v775_v10  ;;  %v787_v22 = vld [vmem:[#allocation9 + $0x10] sm:$0xff]  ;;  %v761_v24 = vld [vmem:[#allocation2] sm:$0xff]  ;;  %v772_v28 = vld [vmem:[#allocation6 + $0x18] sm:$0xff] }
  0x1e   :  { %363 = vmatpush.bf16.msra.mxu2 %v782_v4  ;;  %v292_v25 = vld [vmem:[%s1133_s1] sm:$0xf]  ;;  %v786_v29 = vld [vmem:[#allocation9 + $0x8] sm:$0xff]  ;;  %v771_v30 = vld [vmem:[#allocation6 + $0x10] sm:$0xff] }
  0x1f   :  { %183 = vmatpush.bf16.msra.mxu0 %v766_v6  ;;  %v112_v26 = vld [vmem:[%s1132_s0] sm:$0xf]  ;;  %v770_v32 = vld [vmem:[#allocation6 + $0x8] sm:$0xff]  ;;  %s1011_s0 = smov [#allocation14]  }
  0x20   :  { %446 = vmatpush.bf16.msra.mxu3 %v790_v12  ;;  %v773_v27 = vld [vmem:[#allocation6 + $0x20] sm:$0xff] }
  0x21   :  { %266 = vmatpush.bf16.msra.mxu1 %v774_v13  ;;  %v785_v31 = vld [vmem:[#allocation9] sm:$0xff] }
  0x22   :  { %364 = vmatpush.bf16.msra.mxu2 %v781_v8  ;;  %v769_v33 = vld [vmem:[#allocation6] sm:$0xff] }
  0x23   :  { %184 = vmatpush.bf16.msra.mxu0 %v765_v11  ;;  %v813_v34 = vld [vmem:[%s1135_s3] ss:$0 sm:$0xff] }
  0x24   :  { %447 = vmatpush.bf16.msra.mxu3 %v789_v16  ;;  %v812_v37 = vld [vmem:[%s1139_s7] ss:$0 sm:$0xff] }
  0x25   :  { %267 = vmatpush.bf16.msra.mxu1 %v773_v27  ;;  %v814_v47 = vld [vmem:[%s1141_s9] ss:$0 sm:$0xff] }
  0x26   :  { %365 = vmatpush.bf16.msra.mxu2 %v780_v14  ;;  %v815_v51 = vld [vmem:[%s1137_s5] ss:$0 sm:$0xff] }
  0x27   :  { %185 = vmatpush.bf16.msra.mxu0 %v764_v15  ;;  %v498_v58 = vld [vmem:[%s1142_s10] sm:$0xff] }
  0x28   :  { %448 = vmatpush.bf16.msra.mxu3 %v788_v19  ;;  %501 = vperm.xlu1 %810, %v498_v58  }
  0x29   :  { %268 = vmatpush.bf16.msra.mxu1 %v772_v28 }
  0x2a   :  { %366 = vmatpush.bf16.msra.mxu2 %v779_v17 }
  0x2b   :  { %186 = vmatpush.bf16.msra.mxu0 %v763_v18 }
  0x2c   :  { %449 = vmatpush.bf16.msra.mxu3 %v787_v22 }
  0x2d   :  { %269 = vmatpush.bf16.msra.mxu1 %v771_v30 }
  0x2e   :  { %367 = vmatpush.bf16.msra.mxu2 %v778_v20  ;;  %v816_v20 = vld [vmem:[%s1143_s11] ss:$0 sm:$0xff] }
  0x2f   :  { %187 = vmatpush.bf16.msra.mxu0 %v762_v21 }
  0x30   :  { %450 = vmatpush.bf16.msra.mxu3 %v786_v29 }
  0x31   :  { %270 = vmatpush.bf16.msra.mxu1 %v770_v32 }
  0x32   :  { %368 = vmatpush.bf16.msra.mxu2 %v777_v23 }
  0x33   :  { %188 = vmatpush.bf16.msra.mxu0 %v761_v24 }
  0x34   :  { %451 = vmatpush.bf16.msra.mxu3 %v785_v31 }
  0x35   :  { %369 = vmatmul.bf16.vlgmr.msra.gmra.mxu2 %v292_v25  ;;  %271 = vmatpush.bf16.msra.mxu1 %v769_v33 }
  0x36   :  { %189 = vmatmul.bf16.vlgmr.msra.gmra.mxu0 %v112_v26 }
  0x9a   :  { %v502_v22 = vpop.permute.xlu1 %501 }
  0x9b   :  { %vm504_vm6 = vcmp.eq.s32.totalorder %v502_v22, %v816_v20 }
  0xb3   :  { %v190_v35 = vpop.f32.mrf.mxu0 }
  0xb4   :  { %v191_v36 = vadd.f32 %v813_v34, %v190_v35 }
  0xb6   :  { %v194_v38 = vmax.f32 %v191_v36, 0.0 }
  0xb8   :  { %v370_v39 = vpop.f32.mrf.mxu2  ;;  %v195_v40 = vpack.c.bf16 %v194_v38, %v194_v38 }
  0xb9   :  { %v371_v41 = vadd.f32 %v812_v37, %v370_v39 }
  0xba   :  { %272 = vmatmul.bf16.vlgmr.msra.gmra.mxu1 %v195_v40 }
  0xbb   :  { %v374_v42 = vmax.f32 %v371_v41, 0.0  ;;  %v192_v43 = vpop.f32.mrf.mxu0 }
  0xbd   :  { %v375_v44 = vpack.c.bf16 %v374_v42, %v374_v42 }
  0xbf   :  { %452 = vmatmul.bf16.vlgmr.msra.gmra.mxu3 %v375_v44 }
  0xc0   :  { %v372_v45 = vpop.f32.mrf.mxu2 }
 0x137   :  { %v273_v46 = vpop.f32.mrf.mxu1 }
 0x138   :  { %v274_v53 = vadd.f32 %v815_v51, %v273_v46 }
 0x13a   :  { %v277_v55 = vmul.f32 %v274_v53, %v274_v53 }
 0x13f   :  { %v275_v48 = vpop.f32.mrf.mxu1 }
 0x142   :  { %v453_v49 = vpop.f32.mrf.mxu3 }
 0x143   :  { %v454_v50 = vadd.f32 %v814_v47, %v453_v49 }
 0x145   :  { %v457_v52 = vmul.f32 %v454_v50, %v454_v50 }
 0x147   :  { %458 = vadd.xlane.f32.xlu0 %v457_v52 }
 0x14a   :  { %v455_v54 = vpop.f32.mrf.mxu3 }
 0x14f   :  { %278 = vadd.xlane.f32.xlu0 %v277_v55 }
 0x1ba   :  { %v459_v56 = vpop.xlane.xlu0 %458 }
 0x1bb   :  { %v460_v57 = vadd.f32 1e-12, %v459_v56 }
 0x1bd   :  { %817 = vrsqrt.f32 %v460_v57  ;;  %vm467_vm1 = vweird.f32 %v460_v57 }
 0x1c2   :  { %v279_v60 = vpop.xlane.xlu0 %278 }
 0x1c3   :  { %v818_v61 = vpop.eup %817  ;;  %v280_v62 = vadd.f32 1e-12, %v279_v60 }
 0x1c4   :  { %v462_v63 = vmul.f32 %v818_v61, %v460_v57  ;;  %vm468_vm0 = vweird.f32 %v818_v61 }
 0x1c5   :  { %819 = vrsqrt.f32 %v280_v62  ;;  %vm469_vm2 = vmor %vm467_vm1, %vm468_vm0  ;;  %vm287_vm4 = vweird.f32 %v280_v62 }
 0x1c6   :  { %v463_v0 = vmul.f32 %v818_v61, %v462_v63 }
 0x1c8   :  { %v464_v1 = vmul.f32 0.5, %v463_v0 }
 0x1ca   :  { %v465_v2 = vsub.f32 1.5, %v464_v1 }
 0x1cb   :  { %v820_v3 = vpop.eup %819 }
 0x1cc   :  { %v466_v4 = vmul.f32 %v818_v61, %v465_v2  ;;  %v282_v5 = vmul.f32 %v820_v3, %v280_v62  ;;  %vm288_vm3 = vweird.f32 %v820_v3 }
 0x1cd   :  { %vm289_vm5 = vmor %vm287_vm4, %vm288_vm3 }
 0x1ce   :  { %v470_v6 = vsel %vm469_vm2, %v818_v61, %v466_v4  ;;  %v283_v7 = vmul.f32 %v820_v3, %v282_v5 }
 0x1cf   :  { %v471_v8 = vmul.f32 %v470_v6, %v454_v50 }
 0x1d0   :  { %v284_v9 = vmul.f32 0.5, %v283_v7 }
 0x1d1   :  { %475 = vst [vmem:[#allocation12] sm:$0xff] %v471_v8  ;;  %v483_v10 = vpack.c.bf16 %v471_v8, %v471_v8 }
 0x1d2   :  { %v285_v11 = vsub.f32 1.5, %v284_v9  ;;  %603 = dma.vmem_to_hbm [thread:$0]  %s599_s28, 128, %s601_s16, [#allocation13]  }
 0x1d3   :  { %491 = vmatpush.bf16.xpose.msrb.mxu0 %v483_v10 }
 0x1d4   :  { %v286_v12 = vmul.f32 %v820_v3, %v285_v11 }
 0x1d6   :  { %v290_v13 = vsel %vm289_vm5, %v820_v3, %v286_v12 }
 0x1d7   :  { %v291_v14 = vmul.f32 %v290_v13, %v274_v53  ;;  %v1010_v53 = vmov 8.0  }
 0x1d9   :  { %473 = vst [vmem:[#allocation11] sm:$0xff] %v291_v14  ;;  %v481_v15 = vpack.c.bf16 %v291_v14, %v291_v14 }
 0x1da   :  { %592 = dma.vmem_to_hbm [thread:$0]  %s588_s27, 128, %s590_s25, [#allocation4]  }
 0x1db   :  { %492 = vmatmul.bf16.vlgmr.msrb.gmra.mxu0 %v481_v15 }
 0x258   :  { %v493_v16 = vpop.f32.mrf.mxu0 }
 0x259   :  { %v497_v17 = vmul.f32 14.285714, %v493_v16 }
 0x25b   :  { %v760_v18 = vadd.f32 -14.285714, %v497_v17 }
 0x25d   :  { %v506_v19 = vmul.f32 1.442695, %v760_v18 }
 0x25f   :  { %821 = vpow2.f32 %v506_v19 }
 0x260   :  { %v495_v21 = vpop.f32.mrf.mxu0 }
 0x265   :  { %v822_v23 = vpop.eup %821 }
 0x266   :  { %v508_v24 = vsel %vm504_vm6, %v822_v23, 0.0  ;;  %v510_v25 = vsel %vm509_vm7, %v822_v23, 0.0 }
 0x267   :  { %511 = vadd.xlane.f32.xlu1 %v510_v25  ;;  %v541_v26 = vrot.slane %v510_v25, 4  ;;  %v513_v27 = vsel %vm509_vm7, %v508_v24, 0.0 }
 0x268   :  { %514 = vadd.xlane.f32.xlu2 %v513_v27  ;;  %v547_v28 = vrot.slane %v513_v27, 4 }
 0x269   :  { %v542_v29 = vadd.f32 %v541_v26, %v510_v25 }
 0x26a   :  { %v548_v30 = vadd.f32 %v547_v28, %v513_v27 }
 0x26b   :  { %v543_v31 = vrot.slane %v542_v29, 2 }
 0x26c   :  { %v549_v32 = vrot.slane %v548_v30, 2 }
 0x26d   :  { %v544_v33 = vadd.f32 %v543_v31, %v542_v29 }
 0x26e   :  { %v550_v34 = vadd.f32 %v549_v32, %v548_v30 }
 0x26f   :  { %v545_v35 = vrot.slane %v544_v33, 1 }
 0x270   :  { %v551_v36 = vrot.slane %v550_v34, 1 }
 0x271   :  { %v546_v37 = vadd.f32 %v545_v35, %v544_v33 }
 0x272   :  { %v552_v38 = vadd.f32 %v551_v36, %v550_v34 }
 0x273   :  { %823 = vlog2.f32 %v546_v37 }
 0x274   :  { %825 = vlog2.f32 %v552_v38 }
 0x279   :  { %v824_v39 = vpop.eup %823 }
 0x27a   :  { %v826_v40 = vpop.eup %825  ;;  %v554_v41 = vmul.f32 0.6931472, %v824_v39 }
 0x27b   :  { %v556_v42 = vmul.f32 0.6931472, %v826_v40 }
 0x27d   :  { %v557_v43 = vsub.f32 %v554_v41, %v556_v42 }
 0x27f   :  { %v559_v44 = vsel %vm558_vm8, %v557_v43, 0.0 }
 0x280   :  { %560 = vadd.xlane.f32.xlu0 %v559_v44 }
 0x2da   :  { %v512_v45 = vpop.xlane.xlu1 %511 }
 0x2db   :  { %827 = vlog2.f32 %v512_v45  ;;  %v515_v46 = vpop.xlane.xlu2 %514 }
 0x2dc   :  { %829 = vlog2.f32 %v515_v46 }
 0x2dd   :  { %831 = vrcp.f32 %v1010_v53 }
 0x2e1   :  { %v828_v47 = vpop.eup %827 }
 0x2e2   :  { %v830_v48 = vpop.eup %829  ;;  %v517_v49 = vmul.f32 0.6931472, %v828_v47 }
 0x2e3   :  { %v519_v50 = vmul.f32 0.6931472, %v830_v48  ;;  %v832_v55 = vpop.eup %831 }
 0x2e4   :  { %v533_v57 = vmul.f32 8.0, %v832_v55  ;;  %vm537_vm10 = vweird.f32 %v832_v55 }
 0x2e5   :  { %v520_v51 = vsub.f32 %v517_v49, %v519_v50 }
 0x2e6   :  { %v534_v59 = vsub.f32 1.0, %v533_v57 }
 0x2e7   :  { %v522_v52 = vsel %vm521_vm9, %v520_v51, 0.0 }
 0x2e8   :  { %523 = vadd.xlane.f32.xlu2 %v522_v52  ;;  %v535_v0 = vmul.f32 %v832_v55, %v534_v59 }
 0x2ea   :  { %v536_v4 = vadd.f32 %v832_v55, %v535_v0 }
 0x2ec   :  { %v538_v8 = vsel %vm537_vm10, %v832_v55, %v536_v4 }
 0x2f3   :  { %v561_v54 = vpop.xlane.xlu0 %560 }
 0x2f4   :  { %v562_v56 = vrot.slane %v561_v54, 4 }
 0x2f6   :  { %v563_v58 = vadd.f32 %v562_v56, %v561_v54 }
 0x2f8   :  { %v564_v61 = vrot.slane %v563_v58, 2 }
 0x2fa   :  { %v565_v1 = vadd.f32 %v564_v61, %v563_v58 }
 0x2fc   :  { %v566_v6 = vrot.slane %v565_v1, 1 }
 0x2fe   :  { %v567_v9 = vadd.f32 %v566_v6, %v565_v1 }
 0x35b   :  { %v524_v60 = vpop.xlane.xlu2 %523 }
 0x35c   :  { %v525_v62 = vrot.slane %v524_v60, 4 }
 0x35e   :  { %v526_v63 = vadd.f32 %v525_v62, %v524_v60 }
 0x360   :  { %v527_v2 = vrot.slane %v526_v63, 2 }
 0x362   :  { %v528_v3 = vadd.f32 %v527_v2, %v526_v63 }
 0x364   :  { %v529_v5 = vrot.slane %v528_v3, 1 }
 0x366   :  { %v530_v7 = vadd.f32 %v529_v5, %v528_v3 }
 0x368   :  { %793 = vpush %v530_v7 }
 0x369   :  { %795 = vpush %v538_v8 }
 0x36a   :  { %797 = vpush %v567_v9 }
 0x399   :  { %s794_s12 = spop %793 }
 0x39a   :  { %s796_s13 = spop %795 }
 0x39b   :  { %s540_s2 = smul.f32 %s796_s13, %s794_s12  ;;  %s798_s15 = spop %797 }
 0x39c   :  { %s577_s6 = smul.f32 %s798_s15, %s796_s13 }
 0x39e   :  { %s578_s1 = sadd.f32 %s577_s6, %s540_s2 }
 0x3a0   :  { %s579_s19 = smul.f32 0.5, %s578_s1 }
 0x3a2   :  { %581 = sst [smem:[#allocation14]] %s579_s19 }
 0x3a3   :  { %612 = dma.smem_to_hbm %s1011_s0, 16, %s610_s18, [#allocation5]  }
 0x3a4   :  { %995 = dma.done.wait [#allocation4], 128  }
 0x3a5   :  { %996 = vsyncadd [#allocation4], 4294967168 }
 0x3a6   :  { %997 = dma.done.wait [#allocation13], 128  }
 0x3a7   :  { %998 = vsyncadd [#allocation13], 4294967168 }
 0x3a8   :  { %999 = dma.done.wait [#allocation5], 16  }
 0x3a9   :  { %1000 = vsyncadd [#allocation5], 4294967280 }
 0x3aa   :  { %625 = sfence }
 0x3ab   :  { %626 = vsyncpa [#allocation3], 1 }
 0x3ac   :  { %627 = vsyncpa [#allocation7], 1 }
 0x3ad   :  { %628 = vsyncpa [#allocation10], 1 }
 0x3ae   :  { %629 = vsyncpa [#allocation4], 1 }
 0x3af   :  { %630 = vsyncpa [#allocation13], 1 }
 0x3b0   :  { %631 = vsyncpa [#allocation5], 1 }

</bundles_post_ra>
